<compile_context>
chip_gen: v6e
topology: v6e:2x2x1
jax: 0.10.0
libtpu: 0.0.40
codegen_flags: <defaults>
</compile_context>

<pallas_src>
import functools
import math

import jax
import jax.numpy as jnp
from jax import lax
from jax.experimental import pallas as pl
from jax.experimental.pallas import tpu as pltpu

LANES = 128
SUBLANES = 8


def _is_v7x():
    """Best-effort chip-generation detection (safe fallback = not v7x)."""
    try:
        kind = jax.devices()[0].device_kind.lower()
    except Exception:
        return False
    return "v7" in kind


def _weights_f32(t):
    """compute_weights(target): piecewise-constant thresholds (f32)."""
    w = jnp.ones_like(t)
    w = jnp.where(t >= 2.0, jnp.float32(2.0), w)
    w = jnp.where(t >= 5.0, jnp.float32(5.0), w)
    w = jnp.where(t >= 10.0, jnp.float32(10.0), w)
    w = jnp.where(t >= 30.0, jnp.float32(50.0), w)
    return w


def _weighted_sq_sum(x, t):
    """Plain-JAX sum(w*(x-t)^2) — used only for the tiny <128-elem tail."""
    x = x.astype(jnp.float32)
    t = t.astype(jnp.float32)
    d = x - t
    return jnp.sum(_weights_f32(t) * d * d)


def _bmse_kernel(x_ref, t_ref, out_ref, *, tile_rows, steps, n_blocks,
                 valid_rows_last, ragged, uneven, fold_g1):
    """Accumulates sum(w*(x-t)^2) per parallel slice into a (1,8,128) block."""
    p = pl.program_id(0)   # core/split axis ("parallel" / CORE_PARALLEL)
    i = pl.program_id(1)   # reduction ("arbitrary") axis

    @pl.when(i == 0)
    def _():
        out_ref[...] = jnp.zeros_like(out_ref)

    x = x_ref[...].astype(jnp.float32)
    t = t_ref[...].astype(jnp.float32)
    d = x - t
    prod = _weights_f32(t) * d * d

    g = tile_rows // SUBLANES
    g2 = g // fold_g1

    def fold(v):
        # Two-level VPU fold (tile_rows,128) -> (8,128): avoids one long
        # dependent add chain over g vregs.
        v4 = v.reshape(fold_g1, g2, SUBLANES, LANES)
        return jnp.sum(jnp.sum(v4, axis=1), axis=0).reshape(1, SUBLANES, LANES)

    blk = p * steps + i  # logical (unclamped) block index

    if ragged:
        # Full blocks: mask-free hot path.
        @pl.when(blk < n_blocks - 1)
        def _():
            out_ref[...] += fold(prod)

        # Ragged last block: rows past `valid_rows_last` hold undefined data
        # from the partial DMA; jnp.where (not multiply) so NaN/Inf cannot
        # propagate.  Executes on exactly one grid step.
        @pl.when(blk == n_blocks - 1)
        def _():
            row_ids = lax.broadcasted_iota(jnp.int32, (tile_rows, LANES), 0)
            masked = jnp.where(row_ids < valid_rows_last, prod,
                               jnp.float32(0.0))
            out_ref[...] += fold(masked)
        # blk >= n_blocks (uneven-split overflow) falls through both branches.
    elif uneven:
        # Scalar-only skip of the single duplicate (clamped) block.
        @pl.when(blk < n_blocks)
        def _():
            out_ref[...] += fold(prod)
    else:
        out_ref[...] += fold(prod)


def _sublane_multiple(dtype):
    # Min second-minor tile multiple by element width (f32:8, bf16:16, int8:32).
    return {4: 8, 2: 16, 1: 32}.get(jnp.dtype(dtype).itemsize, 8)


def bmse_loss(x, target):
    """Weighted MSE loss matching BMSELoss.forward. Returns an f32 scalar."""
    assert x.shape == target.shape, "x and target must have the same shape"
    n_elems = x.size
    assert n_elems > 0

    xf = jnp.ravel(x)        # free reshape; native dtype streamed to the kernel
    tf = jnp.ravel(target)

    # Any tail that does not fill a full 128-lane row is reduced in plain JAX.
    n_main = (n_elems // LANES) * LANES
    rows = n_main // LANES

    tail_sum = jnp.float32(0.0)
    if n_main != n_elems:
        tail_sum = _weighted_sq_sum(xf[n_main:], tf[n_main:])
        if rows > 0:
            xf = xf[:n_main]
            tf = tf[:n_main]

    if rows == 0:
        return tail_sum / jnp.float32(n_elems)

    x2d = xf.reshape(rows, LANES)
    t2d = tf.reshape(rows, LANES)

    on_v7x = _is_v7x()
    # 4 MiB f32 / input block on v7x, 2 MiB elsewhere.
    tile_rows_max = 8192 if on_v7x else 4096

    sub = max(SUBLANES, _sublane_multiple(x2d.dtype), _sublane_multiple(t2d.dtype))
    tile_rows = min(tile_rows_max, ((rows + sub - 1) // sub) * sub)

    n_blocks = pl.cdiv(rows, tile_rows)
    # 2-way split only where there is a second TensorCore to run it.
    num_splits = 2 if (on_v7x and n_blocks >= 2) else 1
    steps = pl.cdiv(n_blocks, num_splits)

    ragged = (rows % tile_rows) != 0
    uneven = (num_splits * steps) != n_blocks
    valid_rows_last = rows - (n_blocks - 1) * tile_rows

    g = tile_rows // SUBLANES
    fold_g1 = math.gcd(g, 32)

    if uneven:
        def in_map(p_, i_):
            # Clamp the single out-of-range trailing block of the uneven
            # split; its contribution is skipped inside the kernel.
            return (jnp.minimum(p_ * steps + i_, n_blocks - 1), 0)
    else:
        def in_map(p_, i_):
            return (p_ * steps + i_, 0)

    kernel = functools.partial(
        _bmse_kernel, tile_rows=tile_rows, steps=steps, n_blocks=n_blocks,
        valid_rows_last=valid_rows_last, ragged=ragged, uneven=uneven,
        fold_g1=fold_g1)

    elem_bytes = (jnp.dtype(x2d.dtype).itemsize + jnp.dtype(t2d.dtype).itemsize)
    cost = pl.CostEstimate(
        flops=13 * rows * LANES,          # 4 cmp + 4 sel + sub + 2 mul + ~2 add
        transcendentals=0,
        bytes_accessed=rows * LANES * elem_bytes
        + num_splits * SUBLANES * LANES * 4,
    )

    if num_splits == 2:
        dim_sem = (pltpu.CORE_PARALLEL, pltpu.ARBITRARY)   # both TCs on v7x
    else:
        dim_sem = ("parallel", "arbitrary")

    partials = pl.pallas_call(
        kernel,
        out_shape=jax.ShapeDtypeStruct((num_splits, SUBLANES, LANES),
                                       jnp.float32),
        grid_spec=pltpu.PrefetchScalarGridSpec(
            num_scalar_prefetch=0,
            grid=(num_splits, steps),
            in_specs=[
                pl.BlockSpec((tile_rows, LANES), in_map),
                pl.BlockSpec((tile_rows, LANES), in_map),
            ],
            out_specs=pl.BlockSpec((1, SUBLANES, LANES),
                                   lambda p, i: (p, 0, 0)),
        ),
        compiler_params=pltpu.CompilerParams(
            dimension_semantics=dim_sem,
            # Safe on every generation: < 64 MiB (v7x physical), well under
            # 128 MiB (v5e/v6e); raises v5e's 16 MiB default so 2 MiB blocks
            # double-buffer comfortably.
            vmem_limit_bytes=48 << 20,
        ),
        cost_estimate=cost,
    )(x2d, t2d)

    total = jnp.sum(partials) + tail_sum
    return total / jnp.float32(n_elems)


def _bmse_ref(x, target):
    """Pure-JAX reference for correctness check."""
    t = target.astype(jnp.float32)
    x = x.astype(jnp.float32)
    return jnp.mean(_weights_f32(t) * (x - t) ** 2)


if __name__ == "__main__":
    key = jax.random.PRNGKey(0)
    kx, kt = jax.random.split(key)

    # Small NCHW-shaped inputs consistent with a radar-echo style loss.
    B, C, H, W = 2, 4, 16, 16
    # Scale so target spans the weight thresholds (0 .. ~40).
    x = jax.random.uniform(kx, (B, C, H, W), jnp.float32, 0.0, 40.0)
    target = jax.random.uniform(kt, (B, C, H, W), jnp.float32, 0.0, 40.0)

    loss = jax.block_until_ready(bmse_loss(x, target))
    ref = jax.block_until_ready(_bmse_ref(x, target))

    assert jnp.allclose(loss, ref, rtol=1e-5, atol=1e-5), (loss, ref)
    print("KERNEL_OK")
</pallas_src>

<mosaic_0001>
module attributes {stable_mosaic.version = 11 : i64} {
  func.func @_bmse_kernel(%arg0: i32, %arg1: i32, %arg2: memref<16x128xf32, #tpu.memory_space<vmem>>, %arg3: memref<16x128xf32, #tpu.memory_space<vmem>>, %arg4: memref<1x8x128xf32, #tpu.memory_space<vmem>>) attributes {dimension_semantics = [#tpu.dimension_semantics<parallel>, #tpu.dimension_semantics<arbitrary>], iteration_bounds = array<i64: 1, 1>, scalar_prefetch = 0 : i64, scratch_operands = 0 : i64, tpu.core_type = #tpu.core_type<tc>, window_params = [{transform_indices = @transform_0, window_bounds = array<i64: 16, 128>}, {transform_indices = @transform_1, window_bounds = array<i64: 16, 128>}, {transform_indices = @transform_2, window_bounds = array<i64: 1, 8, 128>}]} {
    %c0_i32 = arith.constant 0 : i32
    %0 = arith.cmpi eq, %arg1, %c0_i32 : i32
    %1 = arith.extui %0 : i1 to i32
    %c0_i32_0 = arith.constant 0 : i32
    %2 = arith.cmpi ne, %1, %c0_i32_0 : i32
    scf.if %2 {
      %cst_20 = arith.constant 0.000000e+00 : f32
      %32 = vector.broadcast %cst_20 : f32 to vector<1x8x128xf32>
      %c0_21 = arith.constant 0 : index
      %c0_22 = arith.constant 0 : index
      %c0_23 = arith.constant 0 : index
      %33 = vector.load %arg4[%c0_21, %c0_22, %c0_23] : memref<1x8x128xf32, #tpu.memory_space<vmem>>, vector<1x8x128xf32>
      tpu.vector_store %arg4[%c0_21, %c0_22, %c0_23], %32 {strides = array<i32>} : memref<1x8x128xf32, #tpu.memory_space<vmem>>, vector<1x8x128xf32>,
    } else {
    }
    %c0 = arith.constant 0 : index
    %c0_1 = arith.constant 0 : index
    %3 = vector.load %arg2[%c0, %c0_1] : memref<16x128xf32, #tpu.memory_space<vmem>>, vector<16x128xf32>
    %c0_2 = arith.constant 0 : index
    %c0_3 = arith.constant 0 : index
    %4 = vector.load %arg3[%c0_2, %c0_3] : memref<16x128xf32, #tpu.memory_space<vmem>>, vector<16x128xf32>
    %5 = arith.subf %3, %4 : vector<16x128xf32>
    %cst = arith.constant 1.000000e+00 : f32
    %6 = vector.broadcast %cst : f32 to vector<16x128xf32>
    %cst_4 = arith.constant 2.000000e+00 : f32
    %7 = vector.broadcast %cst_4 : f32 to vector<16x128xf32>
    %8 = arith.cmpf oge, %4, %7 : vector<16x128xf32>
    %cst_5 = arith.constant 2.000000e+00 : f32
    %9 = vector.broadcast %cst_5 : f32 to vector<16x128xf32>
    %10 = arith.select %8, %9, %6 : vector<16x128xi1>, vector<16x128xf32>
    %cst_6 = arith.constant 5.000000e+00 : f32
    %11 = vector.broadcast %cst_6 : f32 to vector<16x128xf32>
    %12 = arith.cmpf oge, %4, %11 : vector<16x128xf32>
    %cst_7 = arith.constant 5.000000e+00 : f32
    %13 = vector.broadcast %cst_7 : f32 to vector<16x128xf32>
    %14 = arith.select %12, %13, %10 : vector<16x128xi1>, vector<16x128xf32>
    %cst_8 = arith.constant 1.000000e+01 : f32
    %15 = vector.broadcast %cst_8 : f32 to vector<16x128xf32>
    %16 = arith.cmpf oge, %4, %15 : vector<16x128xf32>
    %cst_9 = arith.constant 1.000000e+01 : f32
    %17 = vector.broadcast %cst_9 : f32 to vector<16x128xf32>
    %18 = arith.select %16, %17, %14 : vector<16x128xi1>, vector<16x128xf32>
    %cst_10 = arith.constant 3.000000e+01 : f32
    %19 = vector.broadcast %cst_10 : f32 to vector<16x128xf32>
    %20 = arith.cmpf oge, %4, %19 : vector<16x128xf32>
    %cst_11 = arith.constant 5.000000e+01 : f32
    %21 = vector.broadcast %cst_11 : f32 to vector<16x128xf32>
    %22 = arith.select %20, %21, %18 : vector<16x128xi1>, vector<16x128xf32>
    %23 = arith.mulf %22, %5 : vector<16x128xf32>
    %24 = arith.mulf %23, %5 : vector<16x128xf32>
    %c0_12 = arith.constant 0 : index
    %c0_13 = arith.constant 0 : index
    %c0_14 = arith.constant 0 : index
    %25 = vector.load %arg4[%c0_12, %c0_13, %c0_14] : memref<1x8x128xf32, #tpu.memory_space<vmem>>, vector<1x8x128xf32>
    %26 = vector.shape_cast %24 : vector<16x128xf32> to vector<2x1x8x128xf32>
    %cst_15 = arith.constant dense<0.000000e+00> : vector<2x8x128xf32>
    %27 = vector.multi_reduction <add>, %26, %cst_15 [1] : vector<2x1x8x128xf32> to vector<2x8x128xf32>
    %cst_16 = arith.constant dense<0.000000e+00> : vector<8x128xf32>
    %28 = vector.multi_reduction <add>, %27, %cst_16 [0] : vector<2x8x128xf32> to vector<8x128xf32>
    %29 = vector.shape_cast %28 : vector<8x128xf32> to vector<1x8x128xf32>
    %30 = arith.addf %25, %29 : vector<1x8x128xf32>
    %c0_17 = arith.constant 0 : index
    %c0_18 = arith.constant 0 : index
    %c0_19 = arith.constant 0 : index
    %31 = vector.load %arg4[%c0_17, %c0_18, %c0_19] : memref<1x8x128xf32, #tpu.memory_space<vmem>>, vector<1x8x128xf32>
    tpu.vector_store %arg4[%c0_17, %c0_18, %c0_19], %30 {strides = array<i32>} : memref<1x8x128xf32, #tpu.memory_space<vmem>>, vector<1x8x128xf32>,
    return
  }
  func.func @transform_0(%arg0: i32, %arg1: i32) -> (i32, i32) {
    %c1_i32 = arith.constant 1 : i32
    %0 = arith.muli %arg0, %c1_i32 : i32
    %1 = arith.addi %0, %arg1 : i32
    %c0_i32 = arith.constant 0 : i32
    %c0_i32_0 = arith.constant 0 : i32
    return %1, %c0_i32 : i32, i32
  }
  func.func @transform_1(%arg0: i32, %arg1: i32) -> (i32, i32) {
    %c1_i32 = arith.constant 1 : i32
    %0 = arith.muli %arg0, %c1_i32 : i32
    %1 = arith.addi %0, %arg1 : i32
    %c0_i32 = arith.constant 0 : i32
    %c0_i32_0 = arith.constant 0 : i32
    return %1, %c0_i32 : i32, i32
  }
  func.func @transform_2(%arg0: i32, %arg1: i32) -> (i32, i32, i32) {
    %c0_i32 = arith.constant 0 : i32
    %c0_i32_0 = arith.constant 0 : i32
    %c0_i32_1 = arith.constant 0 : i32
    return %arg0, %c0_i32, %c0_i32_0 : i32, i32, i32
  }
}

</mosaic_0001>

<bundles_post_ra>
// kernel: tpu_custom_call.1
= control target key start
LH: loop header
LB: loop body
LE: loop exit
PB: predicated region body
PF: predicated region fallthrough
CT: control target
= control target key end

     0   :  { %7 = vsyncpa [#allocation3], 0  ;;  %s208_s0 = inlined_call_operand.hbm [shape: f32[16,128], index: 0, kind: input, shape index: {}]   ;;  %s209_s1 = inlined_call_operand.hbm [shape: f32[16,128], index: 1, kind: input, shape index: {}]   ;;  %s210_s2 = inlined_call_operand.hbm [shape: f32[1,8,128], index: 2, kind: output, shape index: {}]  }
   0x1   :  { %8 = vsyncpa [#allocation6], 0 }
   0x2   :  { %9 = vsyncpa [#allocation4], 0  ;;  %s178_s9 = smov [#allocation2]  }
   0x3   :  { %s19_s10 = sshll.u32 %s178_s9, 4  ;;  %s20_s10 = int_to_ptr.vmem [resolvable:$true] %s19_s10 }
   0x4   :  { %s120_s11 = scalar_lea.vmem %s20_s10, 256  ;;  %p125_p1 = scmp.lt.s32.totalorder %s20_s10, %s20_s10 }
   0x5   :  { %p121_p0 = scmp.ne.s32.totalorder %s20_s10, %s120_s11  ;;  %p126_p2 = scmp.lt.s32.totalorder %s120_s11, %s120_s11 }
   0x7   :  { %p127_p3 = por %p126_p2, %p125_p1 }
   0x9   :  { %p128_p4 = pnand %p127_p3, %p121_p0 }
   0xb   :  { %131 = shalt.err (!%p128_p4)
}
   0xc   :  { %s179_s12 = smov 128   ;;  %s180_s13 = smov 8  }
   0xd   :  { %25 = dma.hbm_to_vmem [thread:$0]  %s208_s0, 256, %s20_s10, [#allocation3], %s179_s12, %s179_s12, %s180_s13  }
   0xe   :  { %s181_s16 = smov [#allocation5]  }
   0xf   :  { %s35_s17 = sshll.u32 %s181_s16, 4  ;;  %s36_s17 = int_to_ptr.vmem [resolvable:$true] %s35_s17 }
  0x10   :  { %s140_s18 = scalar_lea.vmem %s36_s17, 256  ;;  %p145_p6 = scmp.lt.s32.totalorder %s36_s17, %s36_s17 }
  0x11   :  { %p141_p5 = scmp.ne.s32.totalorder %s36_s17, %s140_s18  ;;  %p146_p7 = scmp.lt.s32.totalorder %s140_s18, %s140_s18 }
  0x13   :  { %p147_p8 = por %p146_p7, %p145_p6 }
  0x15   :  { %p148_p9 = pnand %p147_p8, %p141_p5 }
  0x17   :  { %151 = shalt.err (!%p148_p9)
}
  0x18   :  { %41 = dma.hbm_to_vmem [thread:$0]  %s209_s1, 256, %s36_s17, [#allocation6], %s179_s12, %s179_s12, %s180_s13  }
  0x19   :  { %172 = dma.done.wait [#allocation3], 256  }
  0x1a   :  { %173 = vsyncadd [#allocation3], 4294967040 }
  0x1b   :  { %174 = dma.done.wait [#allocation6], 256  }
  0x1c   :  { %175 = vsyncadd [#allocation6], 4294967040  ;;  %v57_v0 = vld [vmem:[#allocation2] sm:$0xff]  ;;  %v58_v1 = vld [vmem:[#allocation2 + $0x8] sm:$0xff]  ;;  %v182_v6 = vmov 1.0   ;;  %s183_s0 = smov [#allocation7]  }
  0x1d   :  { %v59_v2 = vld [vmem:[#allocation5] sm:$0xff]  ;;  %v60_v3 = vld [vmem:[#allocation5 + $0x8] sm:$0xff]  ;;  %s95_s1 = sshll.u32 %s183_s0, 4  ;;  %s96_s1 = int_to_ptr.vmem [resolvable:$true] %s95_s1 }
  0x1e   :  { %v61_v4 = vsub.f32 %v57_v0, %v59_v2  ;;  %vm63_vm0 = vcmp.ge.f32.partialorder %v59_v2, 2.0  ;;  %vm67_vm1 = vcmp.ge.f32.partialorder %v59_v2, 5.0  ;;  %vm71_vm2 = vcmp.ge.f32.partialorder %v59_v2, 10.0  ;;  %s152_s21 = scalar_lea.vmem %s96_s1, 128  ;;  %p157_p11 = scmp.lt.s32.totalorder %s96_s1, %s96_s1 }
  0x1f   :  { %v62_v5 = vsub.f32 %v58_v1, %v60_v3  ;;  %vm64_vm3 = vcmp.ge.f32.partialorder %v60_v3, 2.0  ;;  %v65_v7 = vsel %vm63_vm0, 2.0, %v182_v6  ;;  %vm68_vm4 = vcmp.ge.f32.partialorder %v60_v3, 5.0  ;;  %p153_p10 = scmp.ne.s32.totalorder %s96_s1, %s152_s21  ;;  %p158_p12 = scmp.lt.s32.totalorder %s152_s21, %s152_s21 }
  0x20   :  { %v66_v8 = vsel %vm64_vm3, 2.0, %v182_v6  ;;  %v69_v9 = vsel %vm67_vm1, 5.0, %v65_v7  ;;  %vm72_vm5 = vcmp.ge.f32.partialorder %v60_v3, 10.0  ;;  %vm75_vm6 = vcmp.ge.f32.partialorder %v59_v2, 30.0 }
  0x21   :  { %v70_v10 = vsel %vm68_vm4, 5.0, %v66_v8  ;;  %v73_v11 = vsel %vm71_vm2, 10.0, %v69_v9  ;;  %vm76_vm7 = vcmp.ge.f32.partialorder %v60_v3, 30.0  ;;  %p159_p13 = por %p158_p12, %p157_p11 }
  0x22   :  { %v74_v12 = vsel %vm72_vm5, 10.0, %v70_v10  ;;  %v77_v13 = vsel %vm75_vm6, 50.0, %v73_v11 }
  0x23   :  { %v78_v14 = vsel %vm76_vm7, 50.0, %v74_v12  ;;  %v79_v15 = vmul.f32 %v77_v13, %v61_v4  ;;  %p160_p0 = pnand %p159_p13, %p153_p10 }
  0x24   :  { %v80_v16 = vmul.f32 %v78_v14, %v62_v5 }
  0x25   :  { %v81_v17 = vmul.f32 %v79_v15, %v61_v4 }
  0x26   :  { %v82_v18 = vmul.f32 %v80_v16, %v62_v5 }
  0x28   :  { %v86_v19 = vadd.f32 %v82_v18, %v81_v17 }
  0x2a   :  { %88 = vst [vmem:[#allocation7] sm:$0xff] %v86_v19 }
  0x2b   :  { %163 = shalt.err (!%p160_p0)
}
  0x2c   :  { %98 = dma.vmem_to_hbm [thread:$0]  %s96_s1, 128, %s210_s2, [#allocation4]  }
  0x2d   :  { %176 = dma.done.wait [#allocation4], 128  }
  0x2e   :  { %177 = vsyncadd [#allocation4], 4294967168 }
  0x2f   :  { %102 = vsyncpa [#allocation3], 1 }
  0x30   :  { %103 = vsyncpa [#allocation6], 1 }
  0x31   :  { %104 = vsyncpa [#allocation4], 1 }

</bundles_post_ra>
